<compile_context>
chip_gen: v5e
topology: v5e:2x2
jax: 0.10.0
libtpu: 0.0.40
codegen_flags: <defaults>
</compile_context>

<pallas_src>
import math
import functools

import jax
import jax.numpy as jnp
from jax import lax
from jax.experimental import pallas as pl
from jax.experimental.pallas import tpu as pltpu

_INV_SQRT2 = 1.0 / math.sqrt(2.0)


def _ff_ada_kernel(x_ref, w1_ref, b1_ref, w2_ref, b2_ref, g_ref, o_ref, acc_ref):
    k = pl.program_id(2)

    @pl.when(k == 0)
    def _init():
        acc_ref[...] = jnp.zeros_like(acc_ref)

    # linear1 partial: (tm, d_model) @ (d_model, tk) -> f32 (tm, tk)
    x = x_ref[0]                                   # (tm, d_model), native dtype
    h = jnp.dot(x, w1_ref[...], preferred_element_type=jnp.float32)
    h = h + b1_ref[...].astype(jnp.float32)

    # exact (erf-based) GELU in f32, matching torch.nn.functional.gelu default
    h = 0.5 * h * (1.0 + lax.erf(h * _INV_SQRT2))

    # dropout: identity at inference time

    # linear2 partial accumulation: (tm, tk) @ (tk, d_model) -> f32 (tm, d_model)
    acc_ref[...] += jnp.dot(h.astype(w2_ref.dtype), w2_ref[...],
                            preferred_element_type=jnp.float32)

    @pl.when(k == pl.num_programs(2) - 1)
    def _finalize():
        y = acc_ref[...] + b2_ref[...].astype(jnp.float32)
        o_ref[0] = (g_ref[0].astype(jnp.float32) * y).astype(o_ref.dtype)


def _round_up(x, m):
    return ((x + m - 1) // m) * m


@functools.partial(jax.jit, static_argnames=("tm", "tk", "vmem_limit_bytes"))
def feed_forward_ada(x, gamma, w1, b1, w2, b2, *, tm=256, tk=512,
                     vmem_limit_bytes=64 * 1024 * 1024):
    """x: (B, T, d_model), gamma: (B, 1, d_model) -> (B, T, d_model).

    w1: (d_model, d_ff), b1: (d_ff,), w2: (d_ff, d_model), b2: (d_model,)
    (weights already in x @ W orientation).
    """
    B, T, d_model = x.shape
    d_ff = w1.shape[1]
    out_dtype = x.dtype

    # Pad feature dims to the 128-lane width (lane-dense stores, (8,128) rule)
    # and rows to the tile height. Zero padding contributes nothing to the
    # matmuls; padded rows/cols are sliced away at the end.
    dp = _round_up(d_model, 128)
    fp = _round_up(d_ff, 128)
    tm_eff = min(tm, _round_up(T, 8))
    Tp = _round_up(T, tm_eff)
    tk_eff = min(tk, fp)
    while fp % tk_eff:              # largest multiple of 128 that divides fp
        tk_eff -= 128

    xp = jnp.pad(x, ((0, 0), (0, Tp - T), (0, dp - d_model)))
    gp = jnp.pad(gamma, ((0, 0), (0, 0), (0, dp - d_model)))
    w1p = jnp.pad(w1, ((0, dp - d_model), (0, fp - d_ff)))
    b1p = jnp.pad(b1.reshape(1, d_ff), ((0, 0), (0, fp - d_ff)))
    w2p = jnp.pad(w2, ((0, fp - d_ff), (0, dp - d_model)))
    b2p = jnp.pad(b2.reshape(1, d_model), ((0, 0), (0, dp - d_model)))

    grid = (B, Tp // tm_eff, fp // tk_eff)

    out = pl.pallas_call(
        _ff_ada_kernel,
        out_shape=jax.ShapeDtypeStruct((B, Tp, dp), out_dtype),
        grid_spec=pltpu.PrefetchScalarGridSpec(
            num_scalar_prefetch=0,
            grid=grid,
            in_specs=[
                pl.BlockSpec((1, tm_eff, dp), lambda b, i, k: (b, i, 0)),   # x tile
                pl.BlockSpec((dp, tk_eff), lambda b, i, k: (0, k)),         # w1 k-slab
                pl.BlockSpec((1, tk_eff), lambda b, i, k: (0, k)),          # b1 k-slab
                pl.BlockSpec((tk_eff, dp), lambda b, i, k: (k, 0)),         # w2 k-slab
                pl.BlockSpec((1, dp), lambda b, i, k: (0, 0)),              # b2
                pl.BlockSpec((1, 1, dp), lambda b, i, k: (b, 0, 0)),        # gamma (per batch)
            ],
            out_specs=pl.BlockSpec((1, tm_eff, dp), lambda b, i, k: (b, i, 0)),
            scratch_shapes=[pltpu.VMEM((tm_eff, dp), jnp.float32)],         # f32 accumulator
        ),
        compiler_params=pltpu.CompilerParams(
            dimension_semantics=("parallel", "parallel", "arbitrary"),
            vmem_limit_bytes=vmem_limit_bytes,
        ),
    )(xp, w1p, b1p, w2p, b2p, gp)

    return out[:, :T, :d_model]


def init_params(key, d_model, d_ff, dtype=jnp.float32):
    """Deterministic init mirroring nn.Linear's uniform(-1/sqrt(fan_in), +)."""
    k1, k2, k3, k4 = jax.random.split(key, 4)
    bound1 = 1.0 / math.sqrt(d_model)
    bound2 = 1.0 / math.sqrt(d_ff)
    # stored pre-transposed for x @ W
    w1 = jax.random.uniform(k1, (d_model, d_ff), dtype, -bound1, bound1)
    b1 = jax.random.uniform(k2, (d_ff,), dtype, -bound1, bound1)
    w2 = jax.random.uniform(k3, (d_ff, d_model), dtype, -bound2, bound2)
    b2 = jax.random.uniform(k4, (d_model,), dtype, -bound2, bound2)
    return w1, b1, w2, b2


def _reference(x, gamma, w1, b1, w2, b2):
    h = jnp.dot(x, w1) + b1
    h = jax.nn.gelu(h, approximate=False)
    y = jnp.dot(h, w2) + b2
    return gamma * y


if __name__ == "__main__":
    B, T, d_model, d_ff = 2, 8, 32, 64
    key = jax.random.PRNGKey(0)
    kx, kg, kp = jax.random.split(key, 3)

    x = jax.random.normal(kx, (B, T, d_model), jnp.float32)
    gamma = jax.random.normal(kg, (B, 1, d_model), jnp.float32)
    w1, b1, w2, b2 = init_params(kp, d_model, d_ff)

    out = feed_forward_ada(x, gamma, w1, b1, w2, b2)
    out = jax.block_until_ready(out)

    ref = _reference(x, gamma, w1, b1, w2, b2)
    assert out.shape == (B, T, d_model)
    assert jnp.allclose(out, ref, atol=1e-4, rtol=1e-4), "mismatch vs JAX reference"

    print("KERNEL_OK")
</pallas_src>

<mosaic_0001>
module attributes {stable_mosaic.version = 11 : i64} {
  func.func @_ff_ada_kernel(%arg0: i32, %arg1: i32, %arg2: i32, %arg3: memref<1x8x128xf32, #tpu.memory_space<vmem>>, %arg4: memref<128x128xf32, #tpu.memory_space<vmem>>, %arg5: memref<1x128xf32, #tpu.memory_space<vmem>>, %arg6: memref<128x128xf32, #tpu.memory_space<vmem>>, %arg7: memref<1x128xf32, #tpu.memory_space<vmem>>, %arg8: memref<1x1x128xf32, #tpu.memory_space<vmem>>, %arg9: memref<1x8x128xf32, #tpu.memory_space<vmem>>, %arg10: memref<8x128xf32, #tpu.memory_space<vmem>>) attributes {dimension_semantics = [#tpu.dimension_semantics<parallel>, #tpu.dimension_semantics<parallel>, #tpu.dimension_semantics<arbitrary>], iteration_bounds = array<i64: 2, 1, 1>, scalar_prefetch = 0 : i64, scratch_operands = 1 : i64, tpu.core_type = #tpu.core_type<tc>, window_params = [{transform_indices = @transform_0, window_bounds = array<i64: 1, 8, 128>}, {transform_indices = @transform_1, window_bounds = array<i64: 128, 128>}, {transform_indices = @transform_2, window_bounds = array<i64: 1, 128>}, {transform_indices = @transform_3, window_bounds = array<i64: 128, 128>}, {pipeline_mode = #tpu.pipeline_mode<synchronous>, transform_indices = @transform_4, window_bounds = array<i64: 1, 128>}, {transform_indices = @transform_5, window_bounds = array<i64: 1, 1, 128>}, {transform_indices = @transform_6, window_bounds = array<i64: 1, 8, 128>}]} {
    %c0_i32 = arith.constant 0 : i32
    %0 = arith.cmpi eq, %arg2, %c0_i32 : i32
    %1 = arith.extui %0 : i1 to i32
    %c0_i32_0 = arith.constant 0 : i32
    %2 = arith.cmpi ne, %1, %c0_i32_0 : i32
    scf.if %2 {
      %cst_19 = arith.constant 0.000000e+00 : f32
      %26 = vector.broadcast %cst_19 : f32 to vector<8x128xf32>
      %c0_20 = arith.constant 0 : index
      %c0_21 = arith.constant 0 : index
      %27 = vector.load %arg10[%c0_20, %c0_21] : memref<8x128xf32, #tpu.memory_space<vmem>>, vector<8x128xf32>
      tpu.vector_store %arg10[%c0_20, %c0_21], %26 {strides = array<i32>} : memref<8x128xf32, #tpu.memory_space<vmem>>, vector<8x128xf32>,
    } else {
    }
    %c0 = arith.constant 0 : index
    %c0_1 = arith.constant 0 : index
    %c0_2 = arith.constant 0 : index
    %3 = vector.load %arg3[%c0, %c0_1, %c0_2] : memref<1x8x128xf32, #tpu.memory_space<vmem>>, vector<1x8x128xf32>
    %4 = vector.shape_cast %3 : vector<1x8x128xf32> to vector<8x128xf32>
    %c0_3 = arith.constant 0 : index
    %c0_4 = arith.constant 0 : index
    %5 = vector.load %arg4[%c0_3, %c0_4] : memref<128x128xf32, #tpu.memory_space<vmem>>, vector<128x128xf32>
    %cst = arith.constant dense<0.000000e+00> : vector<8x128xf32>
    %6 = tpu.matmul %4, %5, %cst {dimension_numbers = #tpu.dot_dimension_numbers<[1], [0], [0], [1], [0, 0, 1, 1], [], []>} : vector<8x128xf32>, vector<128x128xf32>, vector<8x128xf32> -> vector<8x128xf32>
    %c0_5 = arith.constant 0 : index
    %c0_6 = arith.constant 0 : index
    %7 = vector.load %arg5[%c0_5, %c0_6] : memref<1x128xf32, #tpu.memory_space<vmem>>, vector<1x128xf32>
    %8 = vector.broadcast %7 : vector<1x128xf32> to vector<8x128xf32>
    %9 = arith.addf %6, %8 : vector<8x128xf32>
    %cst_7 = arith.constant 5.000000e-01 : f32
    %10 = vector.broadcast %cst_7 : f32 to vector<8x128xf32>
    %11 = arith.mulf %10, %9 : vector<8x128xf32>
    %cst_8 = arith.constant 0.707106769 : f32
    %12 = vector.broadcast %cst_8 : f32 to vector<8x128xf32>
    %13 = arith.mulf %9, %12 : vector<8x128xf32>
    %14 = math.erf %13 : vector<8x128xf32>
    %cst_9 = arith.constant 1.000000e+00 : f32
    %15 = vector.broadcast %cst_9 : f32 to vector<8x128xf32>
    %16 = arith.addf %15, %14 : vector<8x128xf32>
    %17 = arith.mulf %11, %16 : vector<8x128xf32>
    %c0_10 = arith.constant 0 : index
    %c0_11 = arith.constant 0 : index
    %18 = vector.load %arg10[%c0_10, %c0_11] : memref<8x128xf32, #tpu.memory_space<vmem>>, vector<8x128xf32>
    %c0_12 = arith.constant 0 : index
    %c0_13 = arith.constant 0 : index
    %19 = vector.load %arg6[%c0_12, %c0_13] : memref<128x128xf32, #tpu.memory_space<vmem>>, vector<128x128xf32>
    %cst_14 = arith.constant dense<0.000000e+00> : vector<8x128xf32>
    %20 = tpu.matmul %17, %19, %cst_14 {dimension_numbers = #tpu.dot_dimension_numbers<[1], [0], [0], [1], [0, 0, 1, 1], [], []>} : vector<8x128xf32>, vector<128x128xf32>, vector<8x128xf32> -> vector<8x128xf32>
    %21 = arith.addf %18, %20 : vector<8x128xf32>
    %c0_15 = arith.constant 0 : index
    %c0_16 = arith.constant 0 : index
    %22 = vector.load %arg10[%c0_15, %c0_16] : memref<8x128xf32, #tpu.memory_space<vmem>>, vector<8x128xf32>
    tpu.vector_store %arg10[%c0_15, %c0_16], %21 {strides = array<i32>} : memref<8x128xf32, #tpu.memory_space<vmem>>, vector<8x128xf32>,
    %c0_i32_17 = arith.constant 0 : i32
    %23 = arith.cmpi eq, %arg2, %c0_i32_17 : i32
    %24 = arith.extui %23 : i1 to i32
    %c0_i32_18 = arith.constant 0 : i32
    %25 = arith.cmpi ne, %24, %c0_i32_18 : i32
    scf.if %25 {
      %c0_19 = arith.constant 0 : index
      %c0_20 = arith.constant 0 : index
      %26 = vector.load %arg10[%c0_19, %c0_20] : memref<8x128xf32, #tpu.memory_space<vmem>>, vector<8x128xf32>
      %c0_21 = arith.constant 0 : index
      %c0_22 = arith.constant 0 : index
      %27 = vector.load %arg7[%c0_21, %c0_22] : memref<1x128xf32, #tpu.memory_space<vmem>>, vector<1x128xf32>
      %28 = vector.broadcast %27 : vector<1x128xf32> to vector<8x128xf32>
      %29 = arith.addf %26, %28 : vector<8x128xf32>
      %c0_23 = arith.constant 0 : index
      %c0_24 = arith.constant 0 : index
      %c0_25 = arith.constant 0 : index
      %30 = vector.load %arg8[%c0_23, %c0_24, %c0_25] : memref<1x1x128xf32, #tpu.memory_space<vmem>>, vector<1x1x128xf32>
      %31 = vector.shape_cast %30 : vector<1x1x128xf32> to vector<1x128xf32>
      %32 = vector.broadcast %31 : vector<1x128xf32> to vector<8x128xf32>
      %33 = arith.mulf %32, %29 : vector<8x128xf32>
      %c0_26 = arith.constant 0 : index
      %c0_27 = arith.constant 0 : index
      %c0_28 = arith.constant 0 : index
      %34 = vector.load %arg9[%c0_26, %c0_27, %c0_28] : memref<1x8x128xf32, #tpu.memory_space<vmem>>, vector<1x8x128xf32>
      %35 = vector.shape_cast %34 : vector<1x8x128xf32> to vector<8x128xf32>
      %36 = vector.shape_cast %33 : vector<8x128xf32> to vector<1x8x128xf32>
      tpu.vector_store %arg9[%c0_26, %c0_27, %c0_28], %36 {strides = array<i32>} : memref<1x8x128xf32, #tpu.memory_space<vmem>>, vector<1x8x128xf32>,
    } else {
    }
    return
  }
  func.func @transform_0(%arg0: i32, %arg1: i32, %arg2: i32) -> (i32, i32, i32) {
    %c0_i32 = arith.constant 0 : i32
    %c0_i32_0 = arith.constant 0 : i32
    return %arg0, %arg1, %c0_i32 : i32, i32, i32
  }
  func.func @transform_1(%arg0: i32, %arg1: i32, %arg2: i32) -> (i32, i32) {
    %c0_i32 = arith.constant 0 : i32
    %c0_i32_0 = arith.constant 0 : i32
    return %c0_i32, %arg2 : i32, i32
  }
  func.func @transform_2(%arg0: i32, %arg1: i32, %arg2: i32) -> (i32, i32) {
    %c0_i32 = arith.constant 0 : i32
    %c0_i32_0 = arith.constant 0 : i32
    return %c0_i32, %arg2 : i32, i32
  }
  func.func @transform_3(%arg0: i32, %arg1: i32, %arg2: i32) -> (i32, i32) {
    %c0_i32 = arith.constant 0 : i32
    %c0_i32_0 = arith.constant 0 : i32
    return %arg2, %c0_i32 : i32, i32
  }
  func.func @transform_4(%arg0: i32, %arg1: i32, %arg2: i32) -> (i32, i32) {
    %c0_i32 = arith.constant 0 : i32
    %c0_i32_0 = arith.constant 0 : i32
    %c0_i32_1 = arith.constant 0 : i32
    return %c0_i32, %c0_i32_0 : i32, i32
  }
  func.func @transform_5(%arg0: i32, %arg1: i32, %arg2: i32) -> (i32, i32, i32) {
    %c0_i32 = arith.constant 0 : i32
    %c0_i32_0 = arith.constant 0 : i32
    %c0_i32_1 = arith.constant 0 : i32
    return %arg0, %c0_i32, %c0_i32_0 : i32, i32, i32
  }
  func.func @transform_6(%arg0: i32, %arg1: i32, %arg2: i32) -> (i32, i32, i32) {
    %c0_i32 = arith.constant 0 : i32
    %c0_i32_0 = arith.constant 0 : i32
    return %arg0, %arg1, %c0_i32 : i32, i32, i32
  }
}

</mosaic_0001>

<bundles_post_ra>
// kernel: feed_forward_ada.1
= control target key start
LH: loop header
LB: loop body
LE: loop exit
PB: predicated region body
PF: predicated region fallthrough
CT: control target
= control target key end

     0   :  { %s1033_s0 = inlined_call_operand.vmem [shape: f32[2,8,128], index: 0, kind: input, shape index: {}]   ;;  %s1034_s1 = inlined_call_operand.vmem [shape: f32[128,128], index: 1, kind: input, shape index: {}]   ;;  %s1035_s2 = inlined_call_operand.vmem [shape: f32[1,128], index: 2, kind: input, shape index: {}]   ;;  %s1036_s3 = inlined_call_operand.vmem [shape: f32[128,128], index: 3, kind: input, shape index: {}]   ;;  %s1037_s4 = inlined_call_operand.vmem [shape: f32[1,128], index: 4, kind: input, shape index: {}]   ;;  %s1038_s5 = inlined_call_operand.vmem [shape: f32[2,1,128], index: 5, kind: input, shape index: {}]   ;;  %s1039_s6 = inlined_call_operand.hbm [shape: f32[2,8,128], index: 6, kind: output, shape index: {}]  }
   0x1   :  { %1040 = sst [smem:[#allocation6_spill]] %s1033_s0 }
   0x2   :  { %11 = vsyncpa [#allocation4], 0 }
   0x3   :  { %13 = vsyncpa [#allocation4 + $0x1], 0  ;;  %s822_s21 = smov 0   ;;  %s824_s22 = smov 0  }
   0x4   :  { %s826_s23 = smov 0   ;;  %s828_s24 = smov 0  }
   0x5   :  { %s830_s25 = smov 0   ;;  %s832_s26 = smov 0  }
   0x6 LB: > { %s632_s27 = sadd.s32 4294967295, %s785_s26   ;;  %s633_s28 = sadd.s32 4294967294, %s785_s26   ;;  %s785_s26 = sphi %s832_s26, %s19_s26   ;;  %s781_s25 = sphi %s830_s25, %s1048_s25   ;;  %s777_s24 = sphi %s828_s24, %s1047_s24   ;;  %s773_s23 = sphi %s826_s23, %s1046_s23   ;;  %s769_s22 = sphi %s824_s22, %s1045_s22   ;;  %s765_s21 = sphi %s822_s21, %s1044_s21  }
   0x7   : > { %s38_s29 = sadd.s32 1, %s781_s25  ;;  %s200_s30 = sadd.s32 1, %s773_s23 }
   0x8   : > { %p40_p0 = scmp.ge.s32.totalorder %s38_s29, 2  ;;  %p210_p1 = scmp.ne.s32.totalorder %s773_s23, %s769_s22 }
   0x9   : > { %p211_p2 = scmp.eq.s32.totalorder %s632_s27, 1  ;;  %p216_p3 = scmp.ne.s32.totalorder %s769_s22, %s765_s21 }
   0xa   : > { %s1050_s29 = smov (%p40_p0, %s38_s29), 0  ;;  %p217_p5 = scmp.eq.s32.totalorder %s633_s28, 1 }
   0xb   : > { %p862_p4 = por %p211_p2, %p210_p1  ;;  %s195_s8 = ssub.s32 %s781_s25, %s1050_s29 }
   0xc   : > { %p639_p6 = scmp.ge.s32.totalorder %s785_s26, 1  ;;  %p198_p7 = scmp.eq.s32.totalorder %s195_s8, 0 }
   0xd   : > { %p869_p8 = por %p217_p5, %p216_p3  ;;  %p276_p9 = scmp.lt.s32.totalorder %s785_s26, 3 }
   0xe   : > { %s875_s10 = scalar_select %p198_p7, %s773_s23, %s200_s30  }
   0xf   : > { %p277_p10 = pnand %p639_p6, %p276_p9 }
  0x10   : > { %p323_p11 = scmp.lt.s32.totalorder (!%p277_p10), %s777_s24, 1  ;;  %s1043_s0 = sld [smem:[#allocation6_spill]] (!%p277_p10) }
  0x11   : > { %280 = sbr.rel (%p277_p10) target bundleno = 366 (0x16e), region = 44  ;;  %s320_s27 = sand.u32 (!%p277_p10), 1, %s769_s22  }
  0x12   : > { %s640_s28 = sshll.u32 (!%p277_p10), %s320_s27, 3  ;;  %s644_s11 = sshll.u32 (!%p277_p10), %s777_s24, 3 }
  0x13   : > { %s502_s15 = scalar_lea.hbm (!%p277_p10), %s1039_s6, %s644_s11  ;;  %s322_s18 = scalar_lea.vmem (!%p277_p10), [#allocation3], %s640_s28 }
  0x14   : > { %s504_s20 = sshll.u32 (!%p277_p10), %s322_s18, 4  ;;  %s505_s20 = int_to_ptr.vmem [resolvable:$true] %s504_s20 }
  0x16   : > { %v367_v0 = vld [vmem:[%s1034_s1 + $0x78] sm:$0xff]  ;;  %v366_v1 = vld [vmem:[%s1034_s1 + $0x70] sm:$0xff]  ;;  %v365_v2 = vld [vmem:[%s1034_s1 + $0x68] sm:$0xff]  ;;  %s912_s19 = scalar_select %p323_p11, %s777_s24, 1 }
  0x17   : > { %372 = vmatpush.msra.mxu0 %v367_v0  ;;  %v364_v3 = vld [vmem:[%s1034_s1 + $0x60] sm:$0xff]  ;;  %v363_v4 = vld [vmem:[%s1034_s1 + $0x58] sm:$0xff]  ;;  %v362_v5 = vld [vmem:[%s1034_s1 + $0x50] sm:$0xff]  ;;  %s491_s24 = scalar_lea.sflag [#allocation4], %s320_s27 }
  0x18   : > { %v361_v6 = vld [vmem:[%s1034_s1 + $0x48] sm:$0xff]  ;;  %v360_v7 = vld [vmem:[%s1034_s1 + $0x40] sm:$0xff]  ;;  %v359_v8 = vld [vmem:[%s1034_s1 + $0x38] sm:$0xff]  ;;  %s641_s8 = sshll.u32 %s912_s19, 3  ;;  %s345_s30 = scalar_lea.vmem %s1038_s5, %s912_s19 }
  0x19   : > { %373 = vmatpush.msra.mxu0 %v366_v1  ;;  %v358_v9 = vld [vmem:[%s1034_s1 + $0x30] sm:$0xff]  ;;  %v357_v10 = vld [vmem:[%s1034_s1 + $0x28] sm:$0xff]  ;;  %v356_v11 = vld [vmem:[%s1034_s1 + $0x20] sm:$0xff]  ;;  %s329_s17 = scalar_lea.vmem %s1043_s0, %s641_s8  ;;  %s506_s0 = sshll.u32 %s502_s15, 4  ;;  %s507_s0 = int_to_ptr.hbm [resolvable:$true] %s506_s0 }
  0x1a   : > { %v355_v12 = vld [vmem:[%s1034_s1 + $0x18] sm:$0xff]  ;;  %v354_v13 = vld [vmem:[%s1034_s1 + $0x10] sm:$0xff]  ;;  %v353_v14 = vld [vmem:[%s1034_s1 + $0x8] sm:$0xff]  ;;  %s721_s12 = sshra.s32 %s507_s0, 4  ;;  %s722_s12 = int_to_ptr.hbm [resolvable:$true] %s721_s12 }
  0x1b   : > { %374 = vmatpush.msra.mxu0 %v365_v2  ;;  %v352_v15 = vld [vmem:[%s1034_s1] sm:$0xff]  ;;  %v452_v17 = vld [vmem:[%s1036_s3 + $0x78] sm:$0xff]  ;;  %v451_v18 = vld [vmem:[%s1036_s3 + $0x70] sm:$0xff]  ;;  %s723_s13 = scalar_lea.hbm %s722_s12, 8  ;;  %p728_p1 = scmp.lt.s32.totalorder %s722_s12, %s1039_s6 }
  0x1c   : > { %v351_v16 = vld [vmem:[%s329_s17] sm:$0xff]  ;;  %453 = vmatpush.msra.mxu1 %v452_v17  ;;  %v450_v19 = vld [vmem:[%s1036_s3 + $0x68] sm:$0xff]  ;;  %v448_v22 = vld [vmem:[%s1036_s3 + $0x58] sm:$0xff]  ;;  %p724_p12 = scmp.ne.s32.totalorder %s722_s12, %s723_s13 }
  0x1d   : > { %375 = vmatpush.msra.mxu0 %v364_v3  ;;  %v449_v20 = vld [vmem:[%s1036_s3 + $0x60] sm:$0xff]  ;;  %v447_v23 = vld [vmem:[%s1036_s3 + $0x50] sm:$0xff]  ;;  %v446_v25 = vld [vmem:[%s1036_s3 + $0x48] sm:$0xff] }
  0x1e   : > { %454 = vmatpush.msra.mxu1 %v451_v18  ;;  %v702_v21 = vld [vmem:[%s1035_s2] ss:$0 sm:$0xff]  ;;  %v444_v29 = vld [vmem:[%s1036_s3 + $0x38] sm:$0xff]  ;;  %v443_v31 = vld [vmem:[%s1036_s3 + $0x30] sm:$0xff]  ;;  %p725_p13 = pnand %p724_p12, %p862_p4 }
  0x1f   : > { %376 = vmatpush.msra.mxu0 %v363_v4  ;;  %v445_v27 = vld [vmem:[%s1036_s3 + $0x40] sm:$0xff]  ;;  %v442_v33 = vld [vmem:[%s1036_s3 + $0x28] sm:$0xff]  ;;  %v440_v39 = vld [vmem:[%s1036_s3 + $0x18] sm:$0xff] }
  0x20   : > { %455 = vmatpush.msra.mxu1 %v450_v19  ;;  %v441_v36 = vld [vmem:[%s1036_s3 + $0x20] sm:$0xff]  ;;  %v439_v42 = vld [vmem:[%s1036_s3 + $0x10] sm:$0xff]  ;;  %v438_v45 = vld [vmem:[%s1036_s3 + $0x8] sm:$0xff]  ;;  %p726_p0 = pneg %p725_p13 }
  0x21   : > { %377 = vmatpush.msra.mxu0 %v362_v5  ;;  %v437_v47 = vld [vmem:[%s1036_s3] sm:$0xff] }
  0x22   : > { %456 = vmatpush.msra.mxu1 %v449_v20 }
  0x23   : > { %378 = vmatpush.msra.mxu0 %v361_v6 }
  0x24   : > { %457 = vmatpush.msra.mxu1 %v448_v22 }
  0x25   : > { %379 = vmatpush.msra.mxu0 %v360_v7 }
  0x26   : > { %458 = vmatpush.msra.mxu1 %v447_v23 }
  0x27   : > { %380 = vmatpush.msra.mxu0 %v359_v8 }
  0x28   : > { %459 = vmatpush.msra.mxu1 %v446_v25 }
  0x29   : > { %381 = vmatpush.msra.mxu0 %v358_v9 }
  0x2a   : > { %460 = vmatpush.msra.mxu1 %v445_v27 }
  0x2b   : > { %382 = vmatpush.msra.mxu0 %v357_v10 }
  0x2c   : > { %461 = vmatpush.msra.mxu1 %v444_v29 }
  0x2d   : > { %383 = vmatpush.msra.mxu0 %v356_v11  ;;  %v703_v11 = vld [vmem:[%s1037_s4] ss:$0 sm:$0xff] }
  0x2e   : > { %462 = vmatpush.msra.mxu1 %v443_v31 }
  0x2f   : > { %384 = vmatpush.msra.mxu0 %v355_v12  ;;  %v704_v12 = vld [vmem:[%s345_s30] ss:$0 sm:$0xff]  ;;  %s727_s30 = scalar_lea.hbm %s1039_s6, 16 }
  0x30   : > { %463 = vmatpush.msra.mxu1 %v442_v33  ;;  %p729_p2 = scmp.lt.s32.totalorder %s727_s30, %s723_s13 }
  0x31   : > { %385 = vmatpush.msra.mxu0 %v354_v13 }
  0x32   : > { %464 = vmatpush.msra.mxu1 %v441_v36  ;;  %p730_p3 = por %p729_p2, %p728_p1 }
  0x33   : > { %386 = vmatpush.msra.mxu0 %v353_v14 }
  0x34   : > { %465 = vmatpush.msra.mxu1 %v440_v39  ;;  %p731_p5 = pnand %p730_p3, %p726_p0 }
  0x35   : > { %387 = vmatpush.msra.mxu0 %v352_v15 }
  0x36   : > { %388 = vmatmul.f32.vlgmr.msra.gmra.mxu0 %v351_v16  ;;  %466 = vmatpush.msra.mxu1 %v439_v42 }
  0x38   : > { %467 = vmatpush.msra.mxu1 %v438_v45 }
  0x3a   : > { %468 = vmatpush.msra.mxu1 %v437_v47 }
  0xb3   : > { %v389_v24 = vpop.f32.mrf.mxu0 }
  0xb4   : > { %v390_v26 = vadd.f32 %v702_v21, %v389_v24 }
  0xb6   : > { %v393_v28 = vmul.f32 0.70710677, %v390_v26  ;;  %v392_v8 = vmul.f32 0.5, %v390_v26 }
  0xb8   : > { %v394_v30 = vmul.f32 %v393_v28, %v393_v28 }
  0xba   : > { %v395_v32 = vmin.f32 %v394_v30, 16.0 }
  0xbc   : > { %v396_v34 = vmul.f32 2.1237322e-06, %v395_v32  ;;  %v407_v35 = vmul.f32 3.8918573e-05, %v395_v32 }
  0xbe   : > { %v397_v37 = vadd.f32 0.00028619796, %v396_v34  ;;  %v408_v38 = vadd.f32 0.001143296, %v407_v35 }
  0xc0   : > { %v398_v40 = vmul.f32 %v397_v37, %v395_v32  ;;  %v409_v41 = vmul.f32 %v408_v38, %v395_v32 }
  0xc2   : > { %v410_v43 = vadd.f32 0.014752088, %v409_v41  ;;  %v399_v44 = vadd.f32 0.0036580483, %v398_v40 }
  0xc4   : > { %v411_v46 = vmul.f32 %v410_v43, %v395_v32  ;;  %v400_v49 = vmul.f32 %v399_v44, %v395_v32 }
  0xc6   : > { %v412_v48 = vadd.f32 0.112945676, %v411_v46  ;;  %v401_v52 = vadd.f32 0.05243302, %v400_v49 }
  0xc8   : > { %v413_v50 = vmul.f32 %v412_v48, %v395_v32  ;;  %v402_v55 = vmul.f32 %v401_v52, %v395_v32 }
  0xca   : > { %v414_v51 = vadd.f32 0.4994258, %v413_v50  ;;  %v403_v56 = vadd.f32 0.18741608, %v402_v55 }
  0xcc   : > { %v415_v53 = vmul.f32 %v414_v51, %v395_v32  ;;  %v404_v58 = vmul.f32 %v403_v56, %v395_v32 }
  0xce   : > { %v416_v54 = vadd.f32 1.0, %v415_v53  ;;  %v405_v62 = vadd.f32 1.1283791, %v404_v58 }
  0xd0   : > { %705 = vrcp.f32 %v416_v54  ;;  %v428_v61 = vand.u32 2147483648, %v416_v54  ;;  %v426_v0 = vand.u32 2147483647, %v416_v54  ;;  %vm422_vm1 = vweird.f32 %v416_v54 }
  0xd1   : > { %v406_v3 = vmul.f32 %v405_v62, %v393_v28 }
  0xd2   : > { %v429_v2 = vor.u32 1.1754944e-38, %v428_v61  ;;  %vm427_vm3 = vcmp.eq.f32.partialorder %v426_v0, 8.507059e+37 }
  0xd6   : > { %v706_v57 = vpop.eup %705 }
  0xd7   : > { %v418_v59 = vmul.f32 %v706_v57, %v416_v54  ;;  %vm423_vm0 = vweird.f32 %v706_v57 }
  0xd8   : > { %vm424_vm2 = vmor %vm422_vm1, %vm423_vm0 }
  0xd9   : > { %v419_v60 = vsub.f32 1.0, %v418_v59 }
  0xdb   : > { %v420_v63 = vmul.f32 %v706_v57, %v419_v60 }
  0xdd   : > { %v421_v1 = vadd.f32 %v706_v57, %v420_v63 }
  0xdf   : > { %v425_v4 = vsel %vm424_vm2, %v706_v57, %v421_v1 }
  0xe0   : > { %v430_v5 = vsel %vm427_vm3, %v429_v2, %v425_v4 }
  0xe1   : > { %v431_v6 = vmul.f32 %v430_v5, %v406_v3 }
  0xe3   : > { %v642_v7 = vclamps-f32 %v431_v6, 1.0 }
  0xe5   : > { %v434_v9 = vadd.f32 1.0, %v642_v7 }
  0xe7   : > { %v435_v10 = vmul.f32 %v434_v9, %v392_v8 }
  0xe9   : > { %469 = vmatmul.f32.vlgmr.msra.gmra.mxu1 %v435_v10 }
 0x166   : > { %v470_v13 = vpop.f32.mrf.mxu1 }
 0x167   : > { %v483_v14 = vadd.f32 %v703_v11, %v470_v13 }
 0x169   : > { %v488_v15 = vmul.f32 %v704_v12, %v483_v14 }
 0x16b   : > { %489 = vst [vmem:[%s322_s18] sm:$0xff] %v488_v15 }
 0x16c   : > { %734 = shalt.err (!%p731_p5)
}
 0x16d   : > { %647 = dma.vmem_to_hbm [thread:$0]  (%p862_p4), %s505_s20, 128, %s507_s0, %s491_s24  }
 0x16e PF: > { %p653_p6 = scmp.ge.s32.totalorder %s785_s26, 2  ;;  %s518_s27 = sand.u32 1, %s765_s21  }
 0x16f   : > { %s519_s14 = scalar_lea.sflag [#allocation4], %s518_s27 }
 0x170   : > { %p650_p7 = pnand %p653_p6, %p869_p8 }
 0x172   : > { %p651_p9 = pneg %p650_p7 }
 0x174   : > { %760 = dma.done.wait (%p651_p9), %s519_s14, 128  }
 0x175   : > { %762 = vsyncadd (%p651_p9), %s519_s14, 4294967168  ;;  %s19_s26 = sadd.s32 1, %s785_s26   ;;  %s1044_s21 = smov %s769_s22 }
 0x176   : > { %p16_p10 = scmp.ge.s32.totalorder %s19_s26, 4   ;;  %s1045_s22 = smov %s773_s23 }
 0x177   : > { %s1046_s23 = smov %s875_s10  ;;  %s1047_s24 = smov %s781_s25 }
 0x178   : > { %s1048_s25 = smov %s1050_s29  ;;  %18 = sbr.rel (!%p16_p10) target bundleno = 6 (0x6), region = 99 }
 0x17d   :  { %525 = vsyncpa [#allocation4], 1 }
 0x17e   :  { %527 = vsyncpa [#allocation4 + $0x1], 1 }

</bundles_post_ra>
